<compile_context>
chip_gen: v7x
topology: tpu7x:2x2x1
jax: 0.10.0
libtpu: 0.0.40
codegen_flags: <defaults>
</compile_context>

<pallas_src>
import jax
import jax.numpy as jnp
from jax.experimental import pallas as pl
from jax.experimental.pallas import tpu as pltpu

IN_FEATURES = 28 * 28   # 784
NUM_CLASSES = 10


def _round_up(x, m):
    return ((x + m - 1) // m) * m


def mlp_b1_kernel(x_ref, w_ref, b_ref, o_ref):
    # x_ref: (TB, 784)  w_ref: (784, 10)  b_ref: (1, 10)  o_ref: (TB, 10)
    # MXU matmul with f32 accumulation; inputs stay in their native dtype
    # (bf16 goes straight to the MXU, no full-tile upcast).
    logits = jnp.dot(x_ref[...], w_ref[...], preferred_element_type=jnp.float32)
    logits = logits + b_ref[...].astype(jnp.float32)

    # Numerically stable softmax over the class dimension (dim=1 in PyTorch).
    m = jnp.max(logits, axis=-1, keepdims=True)
    e = jnp.exp(logits - m)
    denom = jnp.sum(e, axis=-1, keepdims=True)
    # Exact divide: approx reciprocal (~1e-3 rel. error) broke row-sum==1;
    # this kernel is memory bound so the exact op is free.
    o_ref[...] = (e / denom).astype(o_ref.dtype)


def mlp_b1_forward(x, w, b, *, tb=4096):
    """x: (..., 28, 28) or (B, 784), f32/bf16; w: (784, 10); b: (10,) -> (B, 10) f32."""
    x_flat = x.reshape(-1, IN_FEATURES)          # mirrors x.view(-1, 784)
    B = x_flat.shape[0]
    b2d = b.reshape(1, NUM_CLASSES)

    x_itemsize = jnp.dtype(x_flat.dtype).itemsize
    w_itemsize = jnp.dtype(w.dtype).itemsize

    # Batch-tile sizing:
    #  * cap for portability: 4096 rows f32 (~25 MiB double-buffered, fits the
    #    32 MiB default scoped VMEM and v7x's 64 MiB physical), 8192 rows for
    #    2-byte activations.
    #  * keep >=2 tiles on moderate batches so both v7x TensorCores get work.
    #  * multiple of 16 rows so both f32 (8-sublane) and bf16 (16-sublane)
    #    activations tile cleanly.
    tb = min(tb, 8192 if x_itemsize <= 2 else 4096)
    tb = min(tb, _round_up(pl.cdiv(B, 2), 16))
    tb = max(16, _round_up(tb, 16))

    grid = (pl.cdiv(B, tb),)   # no input padding: partial last tile is masked

    # Explicit scoped-VMEM budget (v5e's default is only 16 MiB).
    x_tile_bytes = tb * IN_FEATURES * x_itemsize
    o_tile_bytes = tb * NUM_CLASSES * 4
    w_bytes = IN_FEATURES * NUM_CLASSES * w_itemsize
    vmem_bytes = 2 * (x_tile_bytes + o_tile_bytes) + w_bytes + (4 << 20)
    vmem_bytes = int(min(max(vmem_bytes, 16 << 20), 48 << 20))

    cost = pl.CostEstimate(
        flops=2 * B * IN_FEATURES * NUM_CLASSES,
        transcendentals=B * NUM_CLASSES,
        bytes_accessed=(B * IN_FEATURES * x_itemsize + w_bytes
                        + NUM_CLASSES * 4 + B * NUM_CLASSES * 4),
    )

    return pl.pallas_call(
        mlp_b1_kernel,
        out_shape=jax.ShapeDtypeStruct((B, NUM_CLASSES), jnp.float32),
        grid=grid,
        in_specs=[
            # x: one (TB, 784) tile per grid step (double-buffered by Pallas).
            pl.BlockSpec((tb, IN_FEATURES), lambda i: (i, 0)),
            # w, b: same block every step -> stays VMEM-resident.
            pl.BlockSpec((IN_FEATURES, NUM_CLASSES), lambda i: (0, 0)),
            pl.BlockSpec((1, NUM_CLASSES), lambda i: (0, 0)),
        ],
        out_specs=pl.BlockSpec((tb, NUM_CLASSES), lambda i: (i, 0)),
        compiler_params=pltpu.CompilerParams(
            dimension_semantics=("parallel",),   # independent batch tiles
            vmem_limit_bytes=vmem_bytes,
        ),
        cost_estimate=cost,
    )(x_flat, w, b2d)


def mlp_b1_reference(x, w, b):
    xf = x.reshape(-1, IN_FEATURES).astype(jnp.float32)
    logits = xf @ w.astype(jnp.float32) + b.astype(jnp.float32)
    return jax.nn.softmax(logits, axis=-1)


def init_params(key):
    """Deterministic init mimicking nn.Linear default (uniform +-1/sqrt(fan_in))."""
    kw, kb = jax.random.split(key)
    bound = 1.0 / jnp.sqrt(jnp.float32(IN_FEATURES))
    w = jax.random.uniform(kw, (IN_FEATURES, NUM_CLASSES), jnp.float32, -bound, bound)
    b = jax.random.uniform(kb, (NUM_CLASSES,), jnp.float32, -bound, bound)
    return w, b


if __name__ == "__main__":
    key = jax.random.PRNGKey(0)
    kx, kp, kx2 = jax.random.split(key, 3)
    w, b = init_params(kp)

    # 1) Small MNIST-like batch, NCHW layout as PyTorch would supply (f32).
    B = 2
    x = jax.random.normal(kx, (B, 1, 28, 28), dtype=jnp.float32)
    out = jax.block_until_ready(mlp_b1_forward(x, w, b))
    ref = mlp_b1_reference(x, w, b)
    assert out.shape == (B, NUM_CLASSES)
    assert bool(jnp.all(jnp.isfinite(out)))
    assert bool(jnp.all(jnp.abs(jnp.sum(out, axis=-1) - 1.0) < 1e-4))
    assert bool(jnp.all(jnp.abs(out - ref) < 2e-3))

    # 2) Ragged batch (partial last tile, no input padding), multiple grid
    #    steps, bf16 activations/weights fed straight to the MXU.
    B2 = 37
    x2 = jax.random.normal(kx2, (B2, 1, 28, 28), dtype=jnp.float32)
    x2_bf = x2.astype(jnp.bfloat16)
    w_bf = w.astype(jnp.bfloat16)
    out2 = jax.block_until_ready(mlp_b1_forward(x2_bf, w_bf, b, tb=16))
    ref2 = mlp_b1_reference(x2_bf.astype(jnp.float32), w_bf.astype(jnp.float32), b)
    assert out2.shape == (B2, NUM_CLASSES)
    assert bool(jnp.all(jnp.isfinite(out2)))
    assert bool(jnp.all(jnp.abs(jnp.sum(out2, axis=-1) - 1.0) < 1e-4))
    assert bool(jnp.all(jnp.abs(out2 - ref2) < 1e-2))

    print("KERNEL_OK")
</pallas_src>

<mosaic_0001>
module attributes {stable_mosaic.version = 11 : i64} {
  func.func @mlp_b1_kernel(%arg0: i32, %arg1: memref<16x784xf32, #tpu.memory_space<vmem>>, %arg2: memref<784x10xf32, #tpu.memory_space<vmem>>, %arg3: memref<1x10xf32, #tpu.memory_space<vmem>>, %arg4: memref<16x10xf32, #tpu.memory_space<vmem>>) attributes {dimension_semantics = [#tpu.dimension_semantics<parallel>], iteration_bounds = array<i64: 1>, scalar_prefetch = 0 : i64, scratch_operands = 0 : i64, tpu.core_type = #tpu.core_type<tc>, window_params = [{transform_indices = @transform_0, window_bounds = array<i64: 16, 784>}, {pipeline_mode = #tpu.pipeline_mode<synchronous>, transform_indices = @transform_1, window_bounds = array<i64: 784, 10>}, {pipeline_mode = #tpu.pipeline_mode<synchronous>, transform_indices = @transform_2, window_bounds = array<i64: 1, 10>}, {transform_indices = @transform_3, window_bounds = array<i64: 16, 10>}]} {
    %c0 = arith.constant 0 : index
    %c0_0 = arith.constant 0 : index
    %0 = vector.load %arg1[%c0, %c0_0] : memref<16x784xf32, #tpu.memory_space<vmem>>, vector<16x784xf32>
    %c0_1 = arith.constant 0 : index
    %c0_2 = arith.constant 0 : index
    %1 = vector.load %arg2[%c0_1, %c0_2] : memref<784x10xf32, #tpu.memory_space<vmem>>, vector<784x10xf32>
    %cst = arith.constant dense<0.000000e+00> : vector<16x10xf32>
    %2 = tpu.matmul %0, %1, %cst {dimension_numbers = #tpu.dot_dimension_numbers<[1], [0], [0], [1], [0, 0, 1, 1], [], []>} : vector<16x784xf32>, vector<784x10xf32>, vector<16x10xf32> -> vector<16x10xf32>
    %c0_3 = arith.constant 0 : index
    %c0_4 = arith.constant 0 : index
    %3 = vector.load %arg3[%c0_3, %c0_4] : memref<1x10xf32, #tpu.memory_space<vmem>>, vector<1x10xf32>
    %4 = vector.broadcast %3 : vector<1x10xf32> to vector<16x10xf32>
    %5 = arith.addf %2, %4 : vector<16x10xf32>
    %cst_5 = arith.constant dense<0xFF800000> : vector<16xf32>
    %6 = vector.multi_reduction <maximumf>, %5, %cst_5 [1] : vector<16x10xf32> to vector<16xf32>
    %7 = vector.shape_cast %6 : vector<16xf32> to vector<16x1xf32>
    %8 = vector.broadcast %7 : vector<16x1xf32> to vector<16x10xf32>
    %9 = arith.subf %5, %8 : vector<16x10xf32>
    %10 = math.exp %9 : vector<16x10xf32>
    %cst_6 = arith.constant dense<0.000000e+00> : vector<16xf32>
    %11 = vector.multi_reduction <add>, %10, %cst_6 [1] : vector<16x10xf32> to vector<16xf32>
    %12 = vector.shape_cast %11 : vector<16xf32> to vector<16x1xf32>
    %13 = vector.broadcast %12 : vector<16x1xf32> to vector<16x10xf32>
    %14 = arith.divf %10, %13 : vector<16x10xf32>
    %c0_7 = arith.constant 0 : index
    %c0_8 = arith.constant 0 : index
    %15 = vector.load %arg4[%c0_7, %c0_8] : memref<16x10xf32, #tpu.memory_space<vmem>>, vector<16x10xf32>
    tpu.vector_store %arg4[%c0_7, %c0_8], %14 {strides = array<i32>} : memref<16x10xf32, #tpu.memory_space<vmem>>, vector<16x10xf32>,
    return
  }
  func.func @transform_0(%arg0: i32) -> (i32, i32) {
    %c0_i32 = arith.constant 0 : i32
    %c0_i32_0 = arith.constant 0 : i32
    return %arg0, %c0_i32 : i32, i32
  }
  func.func @transform_1(%arg0: i32) -> (i32, i32) {
    %c0_i32 = arith.constant 0 : i32
    %c0_i32_0 = arith.constant 0 : i32
    %c0_i32_1 = arith.constant 0 : i32
    return %c0_i32, %c0_i32_0 : i32, i32
  }
  func.func @transform_2(%arg0: i32) -> (i32, i32) {
    %c0_i32 = arith.constant 0 : i32
    %c0_i32_0 = arith.constant 0 : i32
    %c0_i32_1 = arith.constant 0 : i32
    return %c0_i32, %c0_i32_0 : i32, i32
  }
  func.func @transform_3(%arg0: i32) -> (i32, i32) {
    %c0_i32 = arith.constant 0 : i32
    %c0_i32_0 = arith.constant 0 : i32
    return %arg0, %c0_i32 : i32, i32
  }
}

</mosaic_0001>

<bundles_post_ra>
// kernel: tpu_custom_call.1
= control target key start
LH: loop header
LB: loop body
LE: loop exit
PB: predicated region body
PF: predicated region fallthrough
CT: control target
= control target key end

     0   :  { %8 = vsyncpa [#allocation3], 0  ;;  %v940_v51 = vmov 1983009808   ;;  %v159_v53 = vlaneseq  ;;  %vm306_vm0 = vcmask 130048   ;;  %vm611_vm1 = vcmask 80896   ;;  %s1347_s0 = inlined_call_operand.vmem [shape: f32[2,784], index: 0, kind: input, shape index: {}]   ;;  %s1348_s1 = inlined_call_operand.vmem [shape: f32[784,10], index: 1, kind: input, shape index: {}]   ;;  %s1349_s2 = inlined_call_operand.vmem [shape: f32[1,10], index: 2, kind: input, shape index: {}]   ;;  %s1350_s3 = inlined_call_operand.hbm [shape: f32[2,10], index: 3, kind: output, shape index: {}]  }
   0x1   :  { %v47_v0 = vld [vmem:[%s1348_s1 + $0x80] sm:$0xff]  ;;  %v48_v1 = vld [vmem:[%s1348_s1 + $0x88] sm:$0xff]  ;;  %v49_v12 = vld [vmem:[%s1348_s1 + $0x90] sm:$0xff]  ;;  %v157_v52 = vunpack.c.l.s4 %v940_v51 }
   0x2   :  { %v780_v2 = vpack.c.bf16 %v48_v1, %v47_v0  ;;  %v31_v3 = vld [vmem:[%s1348_s1] sm:$0xff]  ;;  %v32_v4 = vld [vmem:[%s1348_s1 + $0x8] sm:$0xff]  ;;  %v50_v13 = vld [vmem:[%s1348_s1 + $0x98] sm:$0xff] }
   0x3   :  { %v79_v5 = vld [vmem:[%s1348_s1 + $0x180] sm:$0xff]  ;;  %v782_v6 = vpack.c.bf16 %v32_v4, %v31_v3  ;;  %v80_v7 = vld [vmem:[%s1348_s1 + $0x188] sm:$0xff]  ;;  %v33_v14 = vld [vmem:[%s1348_s1 + $0x10] sm:$0xff]  ;;  %v784_v15 = vpack.c.bf16 %v50_v13, %v49_v12  ;;  %v160_v3 = vshrl.u32 %v159_v53, 7 }
   0x4   :  { %v63_v8 = vld [vmem:[%s1348_s1 + $0x100] sm:$0xff]  ;;  %v64_v9 = vld [vmem:[%s1348_s1 + $0x108] sm:$0xff]  ;;  %781 = vmatprep.subr.bf16.mxu0 %v780_v2  ;;  %v812_v10 = vpack.c.bf16 %v80_v7, %v79_v5  ;;  %v34_v16 = vld [vmem:[%s1348_s1 + $0x18] sm:$0xff]  ;;  %v158_v2 = vunpack.c.0.s8 %v157_v52 }
   0x5   :  { %v814_v11 = vpack.c.bf16 %v64_v9, %v63_v8  ;;  %783 = vmatpush3.bf16.msra.mxu0 %v782_v6  ;;  %v81_v17 = vld [vmem:[%s1348_s1 + $0x190] sm:$0xff]  ;;  %v82_v18 = vld [vmem:[%s1348_s1 + $0x198] sm:$0xff]  ;;  %v786_v19 = vpack.c.bf16 %v34_v16, %v33_v14  ;;  %v51_v23 = vld [vmem:[%s1348_s1 + $0xa0] sm:$0xff] }
   0x6   :  { %813 = vmatprep.subr.bf16.mxu1 %v812_v10  ;;  %v816_v20 = vpack.c.bf16 %v82_v18, %v81_v17  ;;  %v65_v21 = vld [vmem:[%s1348_s1 + $0x110] sm:$0xff]  ;;  %v66_v22 = vld [vmem:[%s1348_s1 + $0x118] sm:$0xff]  ;;  %785 = vmatprep.subr.bf16.mxu0 %v784_v15  ;;  %v52_v25 = vld [vmem:[%s1348_s1 + $0xa8] sm:$0xff] }
   0x7   :  { %815 = vmatpush3.bf16.msra.mxu1 %v814_v11  ;;  %v818_v24 = vpack.c.bf16 %v66_v22, %v65_v21  ;;  %v35_v26 = vld [vmem:[%s1348_s1 + $0x20] sm:$0xff]  ;;  %v36_v27 = vld [vmem:[%s1348_s1 + $0x28] sm:$0xff]  ;;  %v788_v28 = vpack.c.bf16 %v52_v25, %v51_v23  ;;  %v53_v35 = vld [vmem:[%s1348_s1 + $0xb0] sm:$0xff] }
   0x8   :  { %817 = vmatprep.subr.bf16.mxu1 %v816_v20  ;;  %v83_v29 = vld [vmem:[%s1348_s1 + $0x1a0] sm:$0xff]  ;;  %v84_v30 = vld [vmem:[%s1348_s1 + $0x1a8] sm:$0xff]  ;;  %v790_v32 = vpack.c.bf16 %v36_v27, %v35_v26  ;;  %v54_v36 = vld [vmem:[%s1348_s1 + $0xb8] sm:$0xff]  ;;  %v1132_v20 = vsub.s32 %v158_v2, %v160_v3 }
   0x9   :  { %v67_v31 = vld [vmem:[%s1348_s1 + $0x120] sm:$0xff]  ;;  %787 = vmatpush3.bf16.msra.mxu0 %v786_v19  ;;  %v820_v33 = vpack.c.bf16 %v84_v30, %v83_v29  ;;  %v68_v34 = vld [vmem:[%s1348_s1 + $0x128] sm:$0xff]  ;;  %v792_v37 = vpack.c.bf16 %v54_v36, %v53_v35  ;;  %v37_v38 = vld [vmem:[%s1348_s1 + $0x30] sm:$0xff] }
   0xa   :  { %789 = vmatprep.subr.bf16.mxu0 %v788_v28  ;;  %v38_v39 = vld [vmem:[%s1348_s1 + $0x38] sm:$0xff]  ;;  %v85_v40 = vld [vmem:[%s1348_s1 + $0x1b0] sm:$0xff]  ;;  %v822_v41 = vpack.c.bf16 %v68_v34, %v67_v31  ;;  %v55_v46 = vld [vmem:[%s1348_s1 + $0xc0] sm:$0xff] }
   0xb   :  { %819 = vmatpush3.bf16.msra.mxu1 %v818_v24  ;;  %v86_v42 = vld [vmem:[%s1348_s1 + $0x1b8] sm:$0xff]  ;;  %v69_v43 = vld [vmem:[%s1348_s1 + $0x130] sm:$0xff]  ;;  %v56_v47 = vld [vmem:[%s1348_s1 + $0xc8] sm:$0xff]  ;;  %v794_v48 = vpack.c.bf16 %v38_v39, %v37_v38 }
   0xc   :  { %821 = vmatprep.subr.bf16.mxu1 %v820_v33  ;;  %v824_v44 = vpack.c.bf16 %v86_v42, %v85_v40  ;;  %v70_v45 = vld [vmem:[%s1348_s1 + $0x138] sm:$0xff]  ;;  %v87_v49 = vld [vmem:[%s1348_s1 + $0x1c0] sm:$0xff]  ;;  %v88_v50 = vld [vmem:[%s1348_s1 + $0x1c8] sm:$0xff]  ;;  %v796_v54 = vpack.c.bf16 %v56_v47, %v55_v46 }
   0xd   :  { %791 = vmatpush3.bf16.msra.mxu0 %v790_v32  ;;  %v39_v55 = vld [vmem:[%s1348_s1 + $0x40] sm:$0xff]  ;;  %v40_v56 = vld [vmem:[%s1348_s1 + $0x48] sm:$0xff]  ;;  %v826_v57 = vpack.c.bf16 %v70_v45, %v69_v43  ;;  %v57_v58 = vld [vmem:[%s1348_s1 + $0xd0] sm:$0xff]  ;;  %v828_v60 = vpack.c.bf16 %v88_v50, %v87_v49 }
   0xe   :  { %793 = vmatprep.subr.bf16.mxu0 %v792_v37  ;;  %v58_v59 = vld [vmem:[%s1348_s1 + $0xd8] sm:$0xff]  ;;  %v71_v61 = vld [vmem:[%s1348_s1 + $0x140] sm:$0xff]  ;;  %v72_v62 = vld [vmem:[%s1348_s1 + $0x148] sm:$0xff]  ;;  %v798_v63 = vpack.c.bf16 %v40_v56, %v39_v55 }
   0xf   :  { %823 = vmatpush3.bf16.msra.mxu1 %v822_v41  ;;  %v89_v0 = vld [vmem:[%s1348_s1 + $0x1d0] sm:$0xff]  ;;  %v90_v1 = vld [vmem:[%s1348_s1 + $0x1d8] sm:$0xff]  ;;  %v800_v4 = vpack.c.bf16 %v58_v59, %v57_v58  ;;  %v830_v8 = vpack.c.bf16 %v72_v62, %v71_v61  ;;  %v59_v10 = vld [vmem:[%s1348_s1 + $0xe0] sm:$0xff] }
  0x10   :  { %825 = vmatprep.subr.bf16.mxu1 %v824_v44  ;;  %v41_v5 = vld [vmem:[%s1348_s1 + $0x50] sm:$0xff]  ;;  %v42_v6 = vld [vmem:[%s1348_s1 + $0x58] sm:$0xff]  ;;  %v60_v11 = vld [vmem:[%s1348_s1 + $0xe8] sm:$0xff]  ;;  %v832_v12 = vpack.c.bf16 %v90_v1, %v89_v0 }
  0x11   :  { %795 = vmatpush3.bf16.msra.mxu0 %v794_v48  ;;  %v73_v7 = vld [vmem:[%s1348_s1 + $0x150] sm:$0xff]  ;;  %v74_v9 = vld [vmem:[%s1348_s1 + $0x158] sm:$0xff]  ;;  %v43_v13 = vld [vmem:[%s1348_s1 + $0x60] sm:$0xff]  ;;  %v802_v16 = vpack.c.bf16 %v42_v6, %v41_v5  ;;  %v804_v21 = vpack.c.bf16 %v60_v11, %v59_v10 }
  0x12   :  { %797 = vmatprep.subr.bf16.mxu0 %v796_v54  ;;  %v44_v14 = vld [vmem:[%s1348_s1 + $0x68] sm:$0xff]  ;;  %v91_v15 = vld [vmem:[%s1348_s1 + $0x1e0] sm:$0xff]  ;;  %v61_v18 = vld [vmem:[%s1348_s1 + $0xf0] sm:$0xff]  ;;  %v834_v22 = vpack.c.bf16 %v74_v9, %v73_v7 }
  0x13   :  { %827 = vmatpush3.bf16.msra.mxu1 %v826_v57  ;;  %v92_v17 = vld [vmem:[%s1348_s1 + $0x1e8] sm:$0xff]  ;;  %v62_v19 = vld [vmem:[%s1348_s1 + $0xf8] sm:$0xff]  ;;  %v75_v26 = vld [vmem:[%s1348_s1 + $0x160] sm:$0xff]  ;;  %v806_v29 = vpack.c.bf16 %v44_v14, %v43_v13 }
  0x14   :  { %829 = vmatprep.subr.bf16.mxu1 %v828_v60  ;;  %v884_v23 = vld [vmem:[%s1347_s0] ss:$14 sps:$4 sm:$0xff]   ;;  %v886_v24 = vld [vmem:[%s1347_s0 + $0x1c] ss:$14 sps:$4 sm:$0xff]   ;;  %v836_v25 = vpack.c.bf16 %v92_v17, %v91_v15  ;;  %v888_v33 = vld [vmem:[%s1347_s0 + $0x4] ss:$14 sps:$4 sm:$0xff]   ;;  %v808_v35 = vpack.c.bf16 %v62_v19, %v61_v18 }
  0x15   :  { %799 = vmatpush3.bf16.msra.mxu0 %v798_v63  ;;  %v76_v27 = vld [vmem:[%s1348_s1 + $0x168] sm:$0xff]  ;;  %v93_v28 = vld [vmem:[%s1348_s1 + $0x1f0] sm:$0xff]  ;;  %v94_v30 = vld [vmem:[%s1348_s1 + $0x1f8] sm:$0xff]  ;;  %v162_v31 = vrot.slane %v884_v23, %v1132_v20  ;;  %v176_v32 = vrot.slane %v886_v24, %v1132_v20  ;;  %v169_v42 = vrot.slane %v888_v33, %v1132_v20 }
  0x16   :  { %801 = vmatprep.subr.bf16.mxu0 %v800_v4  ;;  %v889_v34 = vld [vmem:[%s1347_s0 + $0x20] ss:$14 sps:$4 sm:$0xff]   ;;  %v46_v37 = vld [vmem:[%s1348_s1 + $0x78] sm:$0xff]  ;;  %v838_v38 = vpack.c.bf16 %v76_v27, %v75_v26  ;;  %v840_v44 = vpack.c.bf16 %v94_v30, %v93_v28  ;;  %v899_v27 = vld [vmem:[%s1347_s0 + $0x24] ss:$14 sps:$4 sm:$0xff]  }
  0x17   :  { %831 = vmatpush3.bf16.msra.mxu1 %v830_v8  ;;  %v45_v36 = vld [vmem:[%s1348_s1 + $0x70] sm:$0xff]  ;;  %v185_v39 = vcombine.high %v162_v31, %v176_v32  ;;  %v111_v40 = vld [vmem:[%s1348_s1 + $0x280] sm:$0xff]  ;;  %v112_v41 = vld [vmem:[%s1348_s1 + $0x288] sm:$0xff]  ;;  %v183_v43 = vrot.slane %v889_v34, %v1132_v20  ;;  %v184_v55 = vcombine.low %v162_v31, %v176_v32  ;;  %v212_v32 = vrot.slane %v899_v27, %v1132_v20 }
  0x18   :  { %833 = vmatprep.subr.bf16.mxu1 %v832_v12  ;;  %v77_v45 = vld [vmem:[%s1348_s1 + $0x170] sm:$0xff]  ;;  %v78_v46 = vld [vmem:[%s1348_s1 + $0x178] sm:$0xff]  ;;  %v810_v47 = vpack.c.bf16 %v46_v37, %v45_v36  ;;  %v844_v49 = vpack.c.bf16 %v112_v41, %v111_v40  ;;  %v95_v50 = vld [vmem:[%s1348_s1 + $0x200] sm:$0xff] }
  0x19   :  { %803 = vmatpush3.bf16.msra.mxu0 %v802_v16  ;;  %375 = vmatprep.mubr.f32.mxu0 %v185_v39  ;;  %v187_v48 = vcombine.high %v169_v42, %v183_v43  ;;  %v96_v51 = vld [vmem:[%s1348_s1 + $0x208] sm:$0xff]  ;;  %v842_v52 = vpack.c.bf16 %v78_v46, %v77_v45  ;;  %v113_v53 = vld [vmem:[%s1348_s1 + $0x290] sm:$0xff]  ;;  %v114_v54 = vld [vmem:[%s1348_s1 + $0x298] sm:$0xff]  ;;  %v186_v59 = vcombine.low %v169_v42, %v183_v43 }
  0x1a   :  { %805 = vmatprep.subr.bf16.mxu0 %v804_v21  ;;  %v846_v56 = vpack.c.bf16 %v96_v51, %v95_v50  ;;  %v97_v57 = vld [vmem:[%s1348_s1 + $0x210] sm:$0xff]  ;;  %v98_v58 = vld [vmem:[%s1348_s1 + $0x218] sm:$0xff]  ;;  %v848_v60 = vpack.c.bf16 %v114_v54, %v113_v53  ;;  %v115_v61 = vld [vmem:[%s1348_s1 + $0x2a0] sm:$0xff] }
  0x1b   :  { %835 = vmatpush3.bf16.msra.mxu1 %v834_v22  ;;  %450 = vmatprep.mubr.f32.mxu1 %v187_v48  ;;  %v116_v62 = vld [vmem:[%s1348_s1 + $0x2a8] sm:$0xff]  ;;  %v892_v0 = vld [vmem:[%s1347_s0 + $0x54] ss:$14 sps:$4 sm:$0xff]   ;;  %v850_v2 = vpack.c.bf16 %v98_v58, %v97_v57  ;;  %v118_v13 = vld [vmem:[%s1348_s1 + $0x2b8] sm:$0xff] }
  0x1c   :  { %837 = vmatprep.subr.bf16.mxu1 %v836_v25  ;;  %v890_v63 = vld [vmem:[%s1347_s0 + $0x38] ss:$14 sps:$4 sm:$0xff]   ;;  %v852_v3 = vpack.c.bf16 %v116_v62, %v115_v61  ;;  %v894_v5 = vld [vmem:[%s1347_s0 + $0x3c] ss:$14 sps:$4 sm:$0xff]   ;;  %v117_v9 = vld [vmem:[%s1348_s1 + $0x2b0] sm:$0xff]  ;;  %v247_v11 = vrot.slane %v892_v0, %v1132_v20 }
  0x1d   :  { %807 = vmatpush3.bf16.msra.mxu0 %v806_v29  ;;  %v127_v1 = vld [vmem:[%s1348_s1 + $0x300] sm:$0xff]  ;;  %v128_v4 = vld [vmem:[%s1348_s1 + $0x308] sm:$0xff]  ;;  %v233_v10 = vrot.slane %v890_v63, %v1132_v20  ;;  %v240_v14 = vrot.slane %v894_v5, %v1132_v20  ;;  %v101_v16 = vld [vmem:[%s1348_s1 + $0x230] sm:$0xff]  ;;  %v856_v28 = vpack.c.bf16 %v118_v13, %v117_v9 }
  0x1e   :  { %809 = vmatprep.subr.bf16.mxu0 %v808_v35  ;;  %v895_v6 = vld [vmem:[%s1347_s0 + $0x58] ss:$14 sps:$4 sm:$0xff]   ;;  %v876_v12 = vpack.c.bf16 %v128_v4, %v127_v1  ;;  %v904_v35 = vld [vmem:[%s1347_s0 + $0x44] ss:$14 sps:$4 sm:$0x33]  }
  0x1f   :  { %839 = vmatpush3.bf16.msra.mxu1 %v838_v38  ;;  %v99_v7 = vld [vmem:[%s1348_s1 + $0x220] sm:$0xff]  ;;  %v100_v8 = vld [vmem:[%s1348_s1 + $0x228] sm:$0xff]  ;;  %v254_v15 = vrot.slane %v895_v6, %v1132_v20  ;;  %v102_v17 = vld [vmem:[%s1348_s1 + $0x238] sm:$0xff]  ;;  %v256_v18 = vcombine.high %v233_v10, %v247_v11  ;;  %v255_v19 = vcombine.low %v233_v10, %v247_v11  ;;  %v276_v43 = vrot.slane %v904_v35, %v1132_v20 }
  0x20   :  { %841 = vmatprep.subr.bf16.mxu1 %v840_v44  ;;  %v896_v21 = vld [vmem:[%s1347_s0 + $0x8] ss:$14 sps:$4 sm:$0xff]   ;;  %v854_v22 = vpack.c.bf16 %v100_v8, %v99_v7  ;;  %v119_v23 = vld [vmem:[%s1348_s1 + $0x2c0] sm:$0xff]  ;;  %v898_v26 = vld [vmem:[%s1347_s0 + $0xc] ss:$14 sps:$4 sm:$0x33]   ;;  %v858_v36 = vpack.c.bf16 %v102_v17, %v101_v16 }
  0x21   :  { %811 = vmatpush3.bf16.msra.mxu0 %v810_v47  ;;  %v258_v24 = vcombine.high %v240_v14, %v254_v15  ;;  %v257_v25 = vcombine.low %v240_v14, %v254_v15  ;;  %v120_v29 = vld [vmem:[%s1348_s1 + $0x2c8] sm:$0xff]  ;;  %v198_v31 = vrot.slane %v896_v21, %v1132_v20  ;;  %v205_v33 = vrot.slane %v898_v26, %v1132_v20  ;;  %v103_v40 = vld [vmem:[%s1348_s1 + $0x240] sm:$0xff]  ;;  %v121_v44 = vld [vmem:[%s1348_s1 + $0x2d0] sm:$0xff] }
  0x22   :  { %845 = vmatprep.subr.bf16.mxu0 %v844_v49  ;;  %v901_v30 = vld [vmem:[%s1347_s0 + $0x28] ss:$14 sps:$4 sm:$0x33]   ;;  %v907_v38 = vld [vmem:[%s1347_s0 + $0x60] ss:$14 sps:$4 sm:$0x33]   ;;  %v860_v39 = vpack.c.bf16 %v120_v29, %v119_v23 }
  0x23   :  { %843 = vmatpush3.bf16.msra.mxu1 %v842_v52  ;;  %v219_v34 = vrot.slane %v901_v30, %v1132_v20  ;;  %v221_v37 = vcombine.high %v198_v31, %v212_v32  ;;  %v104_v41 = vld [vmem:[%s1348_s1 + $0x248] sm:$0xff]  ;;  %v122_v45 = vld [vmem:[%s1348_s1 + $0x2d8] sm:$0xff]  ;;  %v290_v46 = vrot.slane %v907_v38, %v1132_v20  ;;  %v105_v50 = vld [vmem:[%s1348_s1 + $0x250] sm:$0xff]  ;;  %v220_v5 = vcombine.low %v198_v31, %v212_v32 }
  0x24   :  { %376 = vmatmul.mubr.f32.vlgmr.msra.gmra.mrb[0].mxu0 %v184_v55  ;;  %877 = vmatprep.subr.bf16.mxu1 %v876_v12  ;;  %v862_v47 = vpack.c.bf16 %v104_v41, %v103_v40  ;;  %v864_v49 = vpack.c.bf16 %v122_v45, %v121_v44  ;;  %v106_v51 = vld [vmem:[%s1348_s1 + $0x258] sm:$0xff]  ;;  %v123_v52 = vld [vmem:[%s1348_s1 + $0x2e0] sm:$0xff]  ;;  %v124_v53 = vld [vmem:[%s1348_s1 + $0x2e8] sm:$0xff] }
  0x25   :  { %847 = vmatpush3.bf16.msra.mxu0 %v846_v56  ;;  %380 = vmatprep.mubr.f32.mxu0 %v256_v18  ;;  %v222_v42 = vcombine.low %v205_v33, %v219_v34  ;;  %v293_v48 = vcombine.low %v276_v43, %v290_v46  ;;  %v866_v54 = vpack.c.bf16 %v106_v51, %v105_v50  ;;  %v107_v56 = vld [vmem:[%s1348_s1 + $0x260] sm:$0xff]  ;;  %v108_v57 = vld [vmem:[%s1348_s1 + $0x268] sm:$0xff]  ;;  %v125_v58 = vld [vmem:[%s1348_s1 + $0x2f0] sm:$0xff] }
  0x26   :  { %451 = vmatmul.mubr.f32.vlgmr.msra.gmra.mrb[0].mxu1 %v186_v59  ;;  %849 = vmatprep.subr.bf16.mxu0 %v848_v60  ;;  %v868_v55 = vpack.c.bf16 %v124_v53, %v123_v52  ;;  %v126_v59 = vld [vmem:[%s1348_s1 + $0x2f8] sm:$0xff]  ;;  %v870_v60 = vpack.c.bf16 %v108_v57, %v107_v56  ;;  %v902_v61 = vld [vmem:[%s1347_s0 + $0x40] ss:$14 sps:$4 sm:$0xff]  }
  0x27   :  { %879 = vmatpush3.bf16.msra.mxu1 %v876_v12  ;;  %455 = vmatprep.mubr.f32.mxu1 %v258_v24  ;;  %v905_v62 = vld [vmem:[%s1347_s0 + $0x5c] ss:$14 sps:$4 sm:$0xff]   ;;  %v872_v63 = vpack.c.bf16 %v126_v59, %v125_v58  ;;  %v109_v0 = vld [vmem:[%s1348_s1 + $0x270] sm:$0xff]  ;;  %v652_v9 = vld [vmem:[%s1349_s2] ss:$0 sm:$0xff] }
  0x28   :  { %381 = vmatmul.mubr.f32.gmra.mrb[2].mxu0 %v255_v19  ;;  %v110_v1 = vld [vmem:[%s1348_s1 + $0x278] sm:$0xff]  ;;  %v283_v4 = vrot.slane %v905_v62, %v1132_v20 }
  0x29   :  { %851 = vmatpush3.bf16.msra.mxu0 %v850_v2  ;;  %525 = vmatprep.mubr.f32.mxu0 %v221_v37  ;;  %v874_v2 = vpack.c.bf16 %v110_v1, %v109_v0 }
  0x2a   :  { %853 = vmatprep.subr.bf16.mxu0 %v852_v3  ;;  %456 = vmatmul.mubr.f32.gmra.mrb[2].mxu1 %v257_v25  ;;  %v269_v3 = vrot.slane %v902_v61, %v1132_v20 }
  0x2b   :  { %777 = vmatprep.mubr.msk.f32.mxu1 %vm306_vm0, %v222_v42 }
  0x2c   :  { %v292_v6 = vcombine.high %v269_v3, %v283_v4  ;;  %v291_v7 = vcombine.low %v269_v3, %v283_v4 }
  0x2d   :  { %855 = vmatpush3.bf16.msra.mxu0 %v854_v22 }
  0x2e   :  { %857 = vmatprep.subr.bf16.mxu0 %v856_v28  ;;  %778 = vmatmul.mubr.msk.f32.vlgmr.msra.gmra.mrb[4].mxu1 %vm306_vm0, %v293_v48 }
  0x31   :  { %859 = vmatpush3.bf16.msra.mxu0 %v858_v36 }
  0x32   :  { %861 = vmatprep.subr.bf16.mxu0 %v860_v39 }
  0x35   :  { %863 = vmatpush3.bf16.msra.mxu0 %v862_v47 }
  0x36   :  { %865 = vmatprep.subr.bf16.mxu0 %v864_v49 }
  0x39   :  { %867 = vmatpush3.bf16.msra.mxu0 %v866_v54 }
  0x3a   :  { %869 = vmatprep.subr.bf16.mxu0 %v868_v55 }
  0x3d   :  { %871 = vmatpush3.bf16.msra.mxu0 %v870_v60 }
  0x3e   :  { %873 = vmatprep.subr.bf16.mxu0 %v872_v63 }
  0x41   :  { %875 = vmatpush3.bf16.msra.mxu0 %v874_v2 }
  0x44   :  { %526 = vmatmul.mubr.f32.vlgmr.msra.gmra.mrb[4].mxu0 %v220_v5 }
  0x45   :  { %530 = vmatprep.mubr.f32.mxu0 %v292_v6 }
  0x48   :  { %531 = vmatmul.mubr.f32.gmra.mrb[6].mxu0 %v291_v7 }
  0xf7   :  { %v687_v8 = vpop.f32.mrb[0].mxu0 }
  0xf8   :  { %v688_v10 = vpop.f32.mrb[1].mxu0 }
  0xf9   :  { %v689_v11 = vadd.f32 %v688_v10, %v687_v8  ;;  %v725_v12 = vpop.f32.mrb[0].mxu1 }
  0xfa   :  { %v726_v13 = vpop.f32.mrb[1].mxu1 }
  0xfb   :  { %v378_v14 = vadd.f32 %v689_v11, %v652_v9  ;;  %v727_v15 = vadd.f32 %v726_v13, %v725_v12  ;;  %v690_v16 = vpop.f32.mrb[2].mxu0 }
  0xfc   :  { %v691_v17 = vpop.f32.mrb[3].mxu0 }
  0xfd   :  { %v453_v20 = vadd.f32 %v727_v15, %v378_v14  ;;  %v728_v18 = vpop.f32.mrb[2].mxu1  ;;  %v692_v19 = vadd.f32 %v691_v17, %v690_v16 }
  0xfe   :  { %v729_v21 = vpop.f32.mrb[3].mxu1 }
  0xff   :  { %v730_v22 = vadd.f32 %v729_v21, %v728_v18  ;;  %v383_v23 = vadd.f32 %v692_v19, %v652_v9 }
 0x101   :  { %v458_v24 = vadd.f32 %v730_v22, %v383_v23  ;;  %v779_v25 = vpop.f32.mrb[4].mxu1 }
 0x102   :  { %v602_v26 = vpop.f32.mrb[5].mxu1 }
 0x117   :  { %v763_v27 = vpop.f32.mrb[4].mxu0 }
 0x118   :  { %v764_v28 = vpop.f32.mrb[5].mxu0 }
 0x119   :  { %v765_v29 = vadd.f32 %v764_v28, %v763_v27 }
 0x11b   :  { %v766_v30 = vpop.f32.mrb[6].mxu0  ;;  %v528_v31 = vadd.f32 %v765_v29, %v453_v20 }
 0x11c   :  { %v767_v32 = vpop.f32.mrb[7].mxu0 }
 0x11d   :  { %v603_v33 = vadd.f32 %v602_v26, %v528_v31  ;;  %v768_v34 = vadd.f32 %v767_v32, %v766_v30 }
 0x11f   :  { %v533_v35 = vadd.f32 %v768_v34, %v458_v24  ;;  %v612_v36 = vsel %vm611_vm1, %v603_v33, -inf }
 0x120   :  { %613 = vmax.xlane.f32.xlu0 %v612_v36 }
 0x121   :  { %v608_v37 = vadd.f32 %v779_v25, %v533_v35 }
 0x123   :  { %v615_v38 = vsel %vm611_vm1, %v608_v37, -inf }
 0x124   :  { %616 = vmax.xlane.f32.xlu0 %v615_v38 }
 0x1ad   :  { %v614_v39 = vpop.xlane.xlu0 %613 }
 0x1ae   :  { %v618_v40 = vsub.f32 %v603_v33, %v614_v39 }
 0x1b0   :  { %v620_v41 = vmul.f32 1.442695, %v618_v40 }
 0x1b1   :  { %v617_v42 = vpop.xlane.xlu0 %616 }
 0x1b2   :  { %908 = vpow2.f32 %v620_v41  ;;  %v619_v43 = vsub.f32 %v608_v37, %v617_v42 }
 0x1b4   :  { %v622_v44 = vmul.f32 1.442695, %v619_v43 }
 0x1b6   :  { %910 = vpow2.f32 %v622_v44 }
 0x1bc   :  { %v909_v45 = vpop.eup %908 }
 0x1bd   :  { %v624_v46 = vsel %vm611_vm1, %v909_v45, 0.0 }
 0x1be   :  { %625 = vadd.xlane.f32.xlu1 %v624_v46 }
 0x1c0   :  { %v911_v47 = vpop.eup %910 }
 0x1c1   :  { %v627_v48 = vsel %vm611_vm1, %v911_v47, 0.0 }
 0x1c2   :  { %628 = vadd.xlane.f32.xlu1 %v627_v48 }
 0x24b   :  { %v626_v49 = vpop.xlane.xlu1 %625 }
 0x24c   :  { %912 = vrcp.f32 %v626_v49 }
 0x24f   :  { %v629_v50 = vpop.xlane.xlu1 %628 }
 0x250   :  { %914 = vrcp.f32 %v629_v50 }
 0x256   :  { %v913_v51 = vpop.eup %912 }
 0x257   :  { %v631_v52 = vmul.f32 %v913_v51, %v909_v45 }
 0x259   :  { %634 = vst.msk [vmem:[#allocation2] sm:$0xff] %vm611_vm1, %v631_v52 }
 0x25a   :  { %v915_v53 = vpop.eup %914 }
 0x25b   :  { %v633_v54 = vmul.f32 %v915_v53, %v911_v47 }
 0x25d   :  { %635 = vst.msk [vmem:[#allocation2 + $0x8] sm:$0xff] %vm611_vm1, %v633_v54 }
 0x25e   :  { %640 = vsyncadd [#allocation3], 224  ;;  %s941_s1 = smov [#allocation2]  }
 0x25f   :  { %s641_s2 = sshll.u32 %s941_s1, 4  ;;  %s642_s2 = int_to_ptr.vmem [resolvable:$true] %s641_s2 }
 0x260   :  { %s916_s25 = scalar_lea.vmem %s642_s2, 32  ;;  %s920_s26 = scalar_lea.vmem %s642_s2, 256 }
 0x261   :  { %p917_p0 = scmp.ne.s32.totalorder %s642_s2, %s916_s25  ;;  %p921_p1 = scmp.lt.s32.totalorder %s642_s2, %s642_s2 }
 0x262   :  { %p922_p2 = scmp.lt.s32.totalorder %s920_s26, %s916_s25 }
 0x264   :  { %p923_p3 = por %p922_p2, %p921_p1 }
 0x266   :  { %p924_p4 = pnand %p923_p3, %p917_p0 }
 0x268   :  { %927 = shalt.err (!%p924_p4)
}
 0x269   :  { %s928_s29 = scalar_lea.hbm %s1350_s3, 32 }
 0x26a   :  { %p929_p5 = scmp.ne.s32.totalorder %s1350_s3, %s928_s29  ;;  %p932_p6 = scmp.lt.u32.totalorder %s928_s29, %s1350_s3 }
 0x26c   :  { %p934_p7 = pnand %p932_p6, %p929_p5 }
 0x26e   :  { %937 = shalt.err (!%p934_p7)
}
 0x26f   :  { %s942_s7 = smov 32   ;;  %s943_s8 = smov 2  }
 0x270   :  { %647 = dma.vmem_to_hbm [thread:$0]  %s642_s2, 32, %s1350_s3, [#allocation3], %s942_s7, %s942_s7, %s943_s8  }
 0x271   :  { %938 = dma.done.wait [#allocation3], 256  }
 0x272   :  { %939 = vsyncadd [#allocation3], 4294967040 }
 0x273   :  { %651 = vsyncpa [#allocation3], 1 }

</bundles_post_ra>
